<compile_context>
chip_gen: v5e
topology: v5e:2x2
jax: 0.10.0
libtpu: 0.0.40
codegen_flags: <defaults>
</compile_context>

<pallas_src>
import jax
import jax.numpy as jnp
from jax.experimental import pallas as pl
from jax.experimental.pallas import tpu as pltpu


def _round_up(x, m):
    return ((x + m - 1) // m) * m


# ---------------------------------------------------------------------------
# Kernel: the whole (teacher-forced) decode sequence in one pallas_call.
# ---------------------------------------------------------------------------
def decoder_gru_kernel(
    tok_ref,      # SMEM (T, B) int32   scalar-prefetched token ids
    emb_ref,      # (O, 1, E)   f32     embedding table (VMEM resident)
    ctx_ref,      # (B, Hp)     f32     context, padded cols are 0
    h0_ref,       # (B, Hp)     f32     initial hidden, padded cols are 0
    wxe_ref,      # (E, 3Hp+Op) wdt     emb rows of [Wi_r|Wi_z|Wi_n|Wfc_emb]
    wxc_ref,      # (Hp,3Hp+Op) wdt     ctx rows of [Wi_r|Wi_z|Wi_n|Wfc_ctx]
    wh_ref,       # (Hp, 3Hp)   wdt     hidden->hidden gate weights [r|z|n]
    wfh_ref,      # (Hp, Op)    wdt     fc rows for hidden
    bx_ref,       # (1, 3Hp+Op) f32     [bi_r+bh_r | bi_z+bh_z | bi_n | fc_b]
    bhn_ref,      # (1, Hp)     f32     bh_n (must stay inside r * (...))
    preds_ref,    # (1, B, Op)  f32 out per-step logits
    hout_ref,     # (B, Hp)     f32 out final hidden (constant block index)
    ctxacc_ref,   # (B, 3Hp+Op) f32 scratch: ctx @ Wxc + biases (step-invariant)
    h_ref,        # (B, Hp)     f32 scratch: hidden carry across grid steps
):
    t = pl.program_id(0)
    B, Hp = h_ref.shape
    H3 = wh_ref.shape[1]                     # 3 * Hp
    wdt = wxe_ref.dtype

    # ---- one-time work at step 0: context contribution + hidden init -------
    @pl.when(t == 0)
    def _init():
        ctxacc_ref[...] = (
            jnp.dot(ctx_ref[...].astype(wdt), wxc_ref[...],
                    preferred_element_type=jnp.float32)
            + bx_ref[...]
        )
        h_ref[...] = h0_ref[...]

    # ---- in-kernel embedding gather (table is VMEM resident) ---------------
    rows = [emb_ref[tok_ref[t, b]] for b in range(B)]     # each (1, E)
    emb = jnp.concatenate(rows, axis=0)                   # (B, E) f32

    h = h_ref[...]

    # Fused x-side matmul: GRU gate pre-activations (3Hp) + fc x-part (Op).
    g = (jnp.dot(emb.astype(wdt), wxe_ref[...],
                 preferred_element_type=jnp.float32)
         + ctxacc_ref[...])                               # (B, 3Hp+Op)
    gh = jnp.dot(h.astype(wdt), wh_ref[...],
                 preferred_element_type=jnp.float32)      # (B, 3Hp)

    # PyTorch GRU equations (gate order r, z, n); elementwise math in f32.
    r = jax.nn.sigmoid(g[:, :Hp] + gh[:, :Hp])
    z = jax.nn.sigmoid(g[:, Hp:2 * Hp] + gh[:, Hp:2 * Hp])
    n = jnp.tanh(g[:, 2 * Hp:H3] + r * (gh[:, 2 * Hp:H3] + bhn_ref[...]))
    h_new = (1.0 - z) * n + z * h

    h_ref[...] = h_new              # carry in VMEM (no HBM round trip)
    hout_ref[...] = h_new           # constant output block; flushed at grid end

    # fc_out(cat(emb, h_new, ctx)): emb/ctx part already sits in g[:, H3:].
    pred = g[:, H3:] + jnp.dot(h_new.astype(wdt), wfh_ref[...],
                               preferred_element_type=jnp.float32)
    preds_ref[...] = pred[None]


# ---------------------------------------------------------------------------
# One-time parameter preparation (transpose / fuse / reorder / pad); hoisted
# out of the decode path.
# ---------------------------------------------------------------------------
def init_decoder_params(key, output_dim, emb_dim, hid_dim):
    """Deterministic synthetic parameters in PyTorch layout."""
    ks = jax.random.split(key, 7)
    s = 0.1
    return dict(
        embedding=jax.random.normal(ks[0], (output_dim, emb_dim), jnp.float32) * s,
        # GRU: weight_ih (3H, E+H), weight_hh (3H, H), biases (3H,), gates [r,z,n]
        w_ih=jax.random.normal(ks[1], (3 * hid_dim, emb_dim + hid_dim), jnp.float32) * s,
        w_hh=jax.random.normal(ks[2], (3 * hid_dim, hid_dim), jnp.float32) * s,
        b_ih=jax.random.normal(ks[3], (3 * hid_dim,), jnp.float32) * s,
        b_hh=jax.random.normal(ks[4], (3 * hid_dim,), jnp.float32) * s,
        # fc_out: (O, E + 2H), (O,)
        fc_w=jax.random.normal(ks[5], (output_dim, emb_dim + 2 * hid_dim), jnp.float32) * s,
        fc_b=jax.random.normal(ks[6], (output_dim,), jnp.float32) * s,
    )


def prepare_decoder_params(params, *, emb_dim, hid_dim, output_dim,
                           weights_dtype=jnp.bfloat16, lane=128):
    """Transpose, fuse, reorder and zero-pad the weights to lane multiples."""
    E, H, O = emb_dim, hid_dim, output_dim
    Hp = _round_up(H, lane)
    Op = _round_up(O, lane)
    NG = 3 * Hp + Op

    def pad2(a, rows, cols):
        return jnp.pad(a, ((0, rows - a.shape[0]), (0, cols - a.shape[1])))

    wi_t = params["w_ih"].T          # (E+H, 3H)  rows: [emb(E); ctx(H)]
    wh_t = params["w_hh"].T          # (H, 3H)
    fc_t = params["fc_w"].T          # (E+2H, O)  rows: [emb(E); hid(H); ctx(H)]

    # x-side (emb rows): gate blocks then fc emb rows, one (E, 3Hp+Op) matrix.
    wxe_gates = jnp.concatenate(
        [pad2(wi_t[:E, g * H:(g + 1) * H], E, Hp) for g in range(3)], axis=1)
    wxe = jnp.concatenate([wxe_gates, pad2(fc_t[:E], E, Op)], axis=1)        # (E, NG)

    # ctx rows (constant across decode steps): same column layout.
    wxc_gates = jnp.concatenate(
        [pad2(wi_t[E:, g * H:(g + 1) * H], Hp, Hp) for g in range(3)], axis=1)
    wxc = jnp.concatenate([wxc_gates, pad2(fc_t[E + H:], Hp, Op)], axis=1)   # (Hp, NG)

    # hidden->hidden gate weights and fc rows for hidden.
    wh = jnp.concatenate(
        [pad2(wh_t[:, g * H:(g + 1) * H], Hp, Hp) for g in range(3)], axis=1)  # (Hp, 3Hp)
    wfh = pad2(fc_t[E:E + H], Hp, Op)                                          # (Hp, Op)

    # Biases: pre-sum where legal; bh_n must stay inside r * (.); fc bias fused.
    bi, bh = params["b_ih"], params["b_hh"]
    padH = lambda v: jnp.pad(v, (0, Hp - H))
    bx = jnp.concatenate([
        padH(bi[:H] + bh[:H]),
        padH(bi[H:2 * H] + bh[H:2 * H]),
        padH(bi[2 * H:]),
        jnp.pad(params["fc_b"], (0, Op - O)),
    ]).reshape(1, NG)
    bhn = padH(bh[2 * H:]).reshape(1, Hp)

    return dict(
        emb=params["embedding"].reshape(O, 1, E),   # (O,1,E) f32, gathered in-kernel
        wxe=wxe.astype(weights_dtype),
        wxc=wxc.astype(weights_dtype),
        wh=wh.astype(weights_dtype),
        wfh=wfh.astype(weights_dtype),
        bx=bx, bhn=bhn,
        dims=(E, H, O, Hp, Op, NG),
    )


# ---------------------------------------------------------------------------
# Wrappers
# ---------------------------------------------------------------------------
def decoder_decode(prepared, token_seq, hidden0, context):
    """Run T teacher-forced decoder steps in ONE pallas_call.

    token_seq: (T, B) int32; hidden0, context: (1, B, H).
    Returns (logits (T, B, O), final hidden (1, B, H)).
    """
    E, H, O, Hp, Op, NG = prepared["dims"]
    T, B = token_seq.shape
    wbytes = jnp.dtype(prepared["wxe"].dtype).itemsize

    ctx_p = jnp.pad(context[0], ((0, 0), (0, Hp - H)))     # (B, Hp)
    h0_p = jnp.pad(hidden0[0], ((0, 0), (0, Hp - H)))      # (B, Hp)

    const = lambda t, tok: (0, 0)        # weights/biases/state: resident in VMEM
    const3 = lambda t, tok: (0, 0, 0)

    grid_spec = pltpu.PrefetchScalarGridSpec(
        num_scalar_prefetch=1,           # token ids -> SMEM
        grid=(T,),
        in_specs=[
            pl.BlockSpec((O, 1, E), const3),        # embedding table
            pl.BlockSpec((B, Hp), const),           # context (padded)
            pl.BlockSpec((B, Hp), const),           # initial hidden (padded)
            pl.BlockSpec((E, NG), const),           # wxe
            pl.BlockSpec((Hp, NG), const),          # wxc
            pl.BlockSpec((Hp, 3 * Hp), const),      # wh
            pl.BlockSpec((Hp, Op), const),          # wfh
            pl.BlockSpec((1, NG), const),           # fused biases
            pl.BlockSpec((1, Hp), const),           # bh_n
        ],
        out_specs=(
            pl.BlockSpec((1, B, Op), lambda t, tok: (t, 0, 0)),   # per-step logits
            pl.BlockSpec((B, Hp), const),                         # final hidden
        ),
        scratch_shapes=[
            pltpu.VMEM((B, NG), jnp.float32),   # ctx @ Wxc + biases (one-time)
            pltpu.VMEM((B, Hp), jnp.float32),   # hidden carry
        ],
    )

    flops = 2 * B * (T * (E * NG + Hp * 3 * Hp + Hp * Op) + Hp * NG)
    bytes_accessed = (
        T * B * 4 + O * E * 4 + 2 * B * Hp * 4
        + (E * NG + Hp * NG + Hp * 3 * Hp + Hp * Op) * wbytes
        + (NG + Hp) * 4
        + T * B * Op * 4 + B * Hp * 4
    )

    preds_p, h_p = pl.pallas_call(
        decoder_gru_kernel,
        out_shape=(
            jax.ShapeDtypeStruct((T, B, Op), jnp.float32),
            jax.ShapeDtypeStruct((B, Hp), jnp.float32),
        ),
        grid_spec=grid_spec,
        compiler_params=pltpu.CompilerParams(
            dimension_semantics=("arbitrary",)),        # steps are sequential
        cost_estimate=pl.CostEstimate(
            flops=flops, transcendentals=T * B * 3 * Hp,
            bytes_accessed=bytes_accessed),
    )(
        token_seq,
        prepared["emb"], ctx_p, h0_p,
        prepared["wxe"], prepared["wxc"], prepared["wh"], prepared["wfh"],
        prepared["bx"], prepared["bhn"],
    )
    # strip lane padding; hidden back to PyTorch's (1, B, H)
    return preds_p[:, :, :O], h_p[None, :, :H]


def decoder_forward(prepared, token_ids, hidden, context):
    """Exact equivalent of Decoder.forward(input, hidden, context) (T=1)."""
    preds, h_new = decoder_decode(prepared, token_ids[None, :], hidden, context)
    return preds[0], h_new


# ---------------------------------------------------------------------------
# Pure-JAX reference mirroring the PyTorch module
# ---------------------------------------------------------------------------
def decoder_step_ref(params, token_ids, hidden, context, *, hid_dim):
    H = hid_dim
    emb = params["embedding"][token_ids]
    ctx = context[0]
    h = hidden[0]
    x = jnp.concatenate([emb, ctx], axis=1)
    gi = x @ params["w_ih"].T + params["b_ih"]
    gh = h @ params["w_hh"].T + params["b_hh"]
    r = jax.nn.sigmoid(gi[:, :H] + gh[:, :H])
    z = jax.nn.sigmoid(gi[:, H:2 * H] + gh[:, H:2 * H])
    n = jnp.tanh(gi[:, 2 * H:] + r * gh[:, 2 * H:])
    h_new = (1.0 - z) * n + z * h
    out = jnp.concatenate([emb, h_new, ctx], axis=1)
    pred = out @ params["fc_w"].T + params["fc_b"]
    return pred, h_new[None, :, :]


def decoder_decode_ref(params, token_seq, hidden, context, *, hid_dim):
    preds = []
    h = hidden
    for t in range(token_seq.shape[0]):
        p, h = decoder_step_ref(params, token_seq[t], h, context, hid_dim=hid_dim)
        preds.append(p)
    return jnp.stack(preds, axis=0), h


if __name__ == "__main__":
    # small shapes consistent with the module
    B, E, H, O, T = 8, 32, 32, 20, 6   # batch, emb_dim, hid_dim, vocab, steps

    key = jax.random.PRNGKey(0)
    kp, ki, kh, kc = jax.random.split(key, 4)

    params = init_decoder_params(kp, output_dim=O, emb_dim=E, hid_dim=H)
    token_seq = jax.random.randint(ki, (T, B), 0, O, dtype=jnp.int32)
    hidden = jax.random.normal(kh, (1, B, H), jnp.float32)      # (1, B, H)
    context = jax.random.normal(kc, (1, B, H), jnp.float32)     # (1, B, H)

    preds_ref, h_ref_fin = decoder_decode_ref(params, token_seq, hidden, context, hid_dim=H)

    # --- f32 weights: tight numerical check ----------------------------------
    prep_f32 = prepare_decoder_params(
        params, emb_dim=E, hid_dim=H, output_dim=O, weights_dtype=jnp.float32)
    preds, h_fin = decoder_decode(prep_f32, token_seq, hidden, context)
    jax.block_until_ready((preds, h_fin))
    assert preds.shape == (T, B, O) and h_fin.shape == (1, B, H)
    assert jnp.allclose(preds, preds_ref, atol=5e-4, rtol=5e-4)
    assert jnp.allclose(h_fin, h_ref_fin, atol=5e-4, rtol=5e-4)

    # --- single-step parity with Decoder.forward (T=1) ------------------------
    pred1, h1 = decoder_forward(prep_f32, token_seq[0], hidden, context)
    pred1_ref, h1_ref = decoder_step_ref(params, token_seq[0], hidden, context, hid_dim=H)
    jax.block_until_ready((pred1, h1))
    assert pred1.shape == (B, O) and h1.shape == (1, B, H)
    assert jnp.allclose(pred1, pred1_ref, atol=5e-4, rtol=5e-4)
    assert jnp.allclose(h1, h1_ref, atol=5e-4, rtol=5e-4)

    # --- bf16 weights (MXU-native on v5e/v6e/v7x; gate math stays f32) --------
    prep_bf16 = prepare_decoder_params(
        params, emb_dim=E, hid_dim=H, output_dim=O, weights_dtype=jnp.bfloat16)
    preds_b, h_b = decoder_decode(prep_bf16, token_seq, hidden, context)
    jax.block_until_ready((preds_b, h_b))
    assert jnp.allclose(preds_b, preds_ref, atol=1e-1, rtol=1e-1)
    assert jnp.allclose(h_b, h_ref_fin, atol=1e-1, rtol=1e-1)

    print("KERNEL_OK")
</pallas_src>

<mosaic_0001>
module attributes {stable_mosaic.version = 11 : i64} {
  func.func @decoder_gru_kernel(%arg0: i32, %arg1: memref<6x8xi32, #tpu.memory_space<smem>>, %arg2: memref<20x1x32xf32, #tpu.memory_space<vmem>>, %arg3: memref<8x128xf32, #tpu.memory_space<vmem>>, %arg4: memref<8x128xf32, #tpu.memory_space<vmem>>, %arg5: memref<32x512xf32, #tpu.memory_space<vmem>>, %arg6: memref<128x512xf32, #tpu.memory_space<vmem>>, %arg7: memref<128x384xf32, #tpu.memory_space<vmem>>, %arg8: memref<128x128xf32, #tpu.memory_space<vmem>>, %arg9: memref<1x512xf32, #tpu.memory_space<vmem>>, %arg10: memref<1x128xf32, #tpu.memory_space<vmem>>, %arg11: memref<1x8x128xf32, #tpu.memory_space<vmem>>, %arg12: memref<8x128xf32, #tpu.memory_space<vmem>>, %arg13: memref<8x512xf32, #tpu.memory_space<vmem>>, %arg14: memref<8x128xf32, #tpu.memory_space<vmem>>) attributes {dimension_semantics = [#tpu.dimension_semantics<arbitrary>], iteration_bounds = array<i64: 6>, scalar_prefetch = 1 : i64, scratch_operands = 2 : i64, tpu.core_type = #tpu.core_type<tc>, window_params = [{pipeline_mode = #tpu.pipeline_mode<synchronous>, transform_indices = @transform_0, window_bounds = array<i64: 20, 1, 32>}, {pipeline_mode = #tpu.pipeline_mode<synchronous>, transform_indices = @transform_1, window_bounds = array<i64: 8, 128>}, {pipeline_mode = #tpu.pipeline_mode<synchronous>, transform_indices = @transform_2, window_bounds = array<i64: 8, 128>}, {pipeline_mode = #tpu.pipeline_mode<synchronous>, transform_indices = @transform_3, window_bounds = array<i64: 32, 512>}, {pipeline_mode = #tpu.pipeline_mode<synchronous>, transform_indices = @transform_4, window_bounds = array<i64: 128, 512>}, {pipeline_mode = #tpu.pipeline_mode<synchronous>, transform_indices = @transform_5, window_bounds = array<i64: 128, 384>}, {pipeline_mode = #tpu.pipeline_mode<synchronous>, transform_indices = @transform_6, window_bounds = array<i64: 128, 128>}, {pipeline_mode = #tpu.pipeline_mode<synchronous>, transform_indices = @transform_7, window_bounds = array<i64: 1, 512>}, {pipeline_mode = #tpu.pipeline_mode<synchronous>, transform_indices = @transform_8, window_bounds = array<i64: 1, 128>}, {transform_indices = @transform_9, window_bounds = array<i64: 1, 8, 128>}, {pipeline_mode = #tpu.pipeline_mode<synchronous>, transform_indices = @transform_10, window_bounds = array<i64: 8, 128>}]} {
    %c0_i32 = arith.constant 0 : i32
    %0 = arith.cmpi eq, %arg0, %c0_i32 : i32
    %1 = arith.extui %0 : i1 to i32
    %c0_i32_0 = arith.constant 0 : i32
    %2 = arith.cmpi ne, %1, %c0_i32_0 : i32
    scf.if %2 {
      %c0_41 = arith.constant 0 : index
      %c0_42 = arith.constant 0 : index
      %88 = vector.load %arg3[%c0_41, %c0_42] : memref<8x128xf32, #tpu.memory_space<vmem>>, vector<8x128xf32>
      %c0_43 = arith.constant 0 : index
      %c0_44 = arith.constant 0 : index
      %89 = vector.load %arg6[%c0_43, %c0_44] : memref<128x512xf32, #tpu.memory_space<vmem>>, vector<128x512xf32>
      %cst_45 = arith.constant dense<0.000000e+00> : vector<8x512xf32>
      %90 = tpu.matmul %88, %89, %cst_45 {dimension_numbers = #tpu.dot_dimension_numbers<[1], [0], [0], [1], [0, 0, 1, 1], [], []>} : vector<8x128xf32>, vector<128x512xf32>, vector<8x512xf32> -> vector<8x512xf32>
      %c0_46 = arith.constant 0 : index
      %c0_47 = arith.constant 0 : index
      %91 = vector.load %arg9[%c0_46, %c0_47] : memref<1x512xf32, #tpu.memory_space<vmem>>, vector<1x512xf32>
      %92 = vector.broadcast %91 : vector<1x512xf32> to vector<8x512xf32>
      %93 = arith.addf %90, %92 : vector<8x512xf32>
      %c0_48 = arith.constant 0 : index
      %c0_49 = arith.constant 0 : index
      %94 = vector.load %arg13[%c0_48, %c0_49] : memref<8x512xf32, #tpu.memory_space<vmem>>, vector<8x512xf32>
      tpu.vector_store %arg13[%c0_48, %c0_49], %93 {strides = array<i32>} : memref<8x512xf32, #tpu.memory_space<vmem>>, vector<8x512xf32>,
      %c0_50 = arith.constant 0 : index
      %c0_51 = arith.constant 0 : index
      %95 = vector.load %arg4[%c0_50, %c0_51] : memref<8x128xf32, #tpu.memory_space<vmem>>, vector<8x128xf32>
      %c0_52 = arith.constant 0 : index
      %c0_53 = arith.constant 0 : index
      %96 = vector.load %arg14[%c0_52, %c0_53] : memref<8x128xf32, #tpu.memory_space<vmem>>, vector<8x128xf32>
      tpu.vector_store %arg14[%c0_52, %c0_53], %95 {strides = array<i32>} : memref<8x128xf32, #tpu.memory_space<vmem>>, vector<8x128xf32>,
    } else {
    }
    %3 = arith.index_cast %arg0 : i32 to index
    %c0 = arith.constant 0 : index
    %4 = memref.load %arg1[%3, %c0] : memref<6x8xi32, #tpu.memory_space<smem>>
    %5 = arith.index_cast %4 : i32 to index
    %c0_1 = arith.constant 0 : index
    %c0_2 = arith.constant 0 : index
    %6 = vector.load %arg2[%5, %c0_1, %c0_2] : memref<20x1x32xf32, #tpu.memory_space<vmem>>, vector<1x1x32xf32>
    %7 = vector.shape_cast %6 : vector<1x1x32xf32> to vector<1x32xf32>
    %8 = arith.index_cast %arg0 : i32 to index
    %c1 = arith.constant 1 : index
    %9 = memref.load %arg1[%8, %c1] : memref<6x8xi32, #tpu.memory_space<smem>>
    %10 = arith.index_cast %9 : i32 to index
    %c0_3 = arith.constant 0 : index
    %c0_4 = arith.constant 0 : index
    %11 = vector.load %arg2[%10, %c0_3, %c0_4] : memref<20x1x32xf32, #tpu.memory_space<vmem>>, vector<1x1x32xf32>
    %12 = vector.shape_cast %11 : vector<1x1x32xf32> to vector<1x32xf32>
    %13 = arith.index_cast %arg0 : i32 to index
    %c2 = arith.constant 2 : index
    %14 = memref.load %arg1[%13, %c2] : memref<6x8xi32, #tpu.memory_space<smem>>
    %15 = arith.index_cast %14 : i32 to index
    %c0_5 = arith.constant 0 : index
    %c0_6 = arith.constant 0 : index
    %16 = vector.load %arg2[%15, %c0_5, %c0_6] : memref<20x1x32xf32, #tpu.memory_space<vmem>>, vector<1x1x32xf32>
    %17 = vector.shape_cast %16 : vector<1x1x32xf32> to vector<1x32xf32>
    %18 = arith.index_cast %arg0 : i32 to index
    %c3 = arith.constant 3 : index
    %19 = memref.load %arg1[%18, %c3] : memref<6x8xi32, #tpu.memory_space<smem>>
    %20 = arith.index_cast %19 : i32 to index
    %c0_7 = arith.constant 0 : index
    %c0_8 = arith.constant 0 : index
    %21 = vector.load %arg2[%20, %c0_7, %c0_8] : memref<20x1x32xf32, #tpu.memory_space<vmem>>, vector<1x1x32xf32>
    %22 = vector.shape_cast %21 : vector<1x1x32xf32> to vector<1x32xf32>
    %23 = arith.index_cast %arg0 : i32 to index
    %c4 = arith.constant 4 : index
    %24 = memref.load %arg1[%23, %c4] : memref<6x8xi32, #tpu.memory_space<smem>>
    %25 = arith.index_cast %24 : i32 to index
    %c0_9 = arith.constant 0 : index
    %c0_10 = arith.constant 0 : index
    %26 = vector.load %arg2[%25, %c0_9, %c0_10] : memref<20x1x32xf32, #tpu.memory_space<vmem>>, vector<1x1x32xf32>
    %27 = vector.shape_cast %26 : vector<1x1x32xf32> to vector<1x32xf32>
    %28 = arith.index_cast %arg0 : i32 to index
    %c5 = arith.constant 5 : index
    %29 = memref.load %arg1[%28, %c5] : memref<6x8xi32, #tpu.memory_space<smem>>
    %30 = arith.index_cast %29 : i32 to index
    %c0_11 = arith.constant 0 : index
    %c0_12 = arith.constant 0 : index
    %31 = vector.load %arg2[%30, %c0_11, %c0_12] : memref<20x1x32xf32, #tpu.memory_space<vmem>>, vector<1x1x32xf32>
    %32 = vector.shape_cast %31 : vector<1x1x32xf32> to vector<1x32xf32>
    %33 = arith.index_cast %arg0 : i32 to index
    %c6 = arith.constant 6 : index
    %34 = memref.load %arg1[%33, %c6] : memref<6x8xi32, #tpu.memory_space<smem>>
    %35 = arith.index_cast %34 : i32 to index
    %c0_13 = arith.constant 0 : index
    %c0_14 = arith.constant 0 : index
    %36 = vector.load %arg2[%35, %c0_13, %c0_14] : memref<20x1x32xf32, #tpu.memory_space<vmem>>, vector<1x1x32xf32>
    %37 = vector.shape_cast %36 : vector<1x1x32xf32> to vector<1x32xf32>
    %38 = arith.index_cast %arg0 : i32 to index
    %c7 = arith.constant 7 : index
    %39 = memref.load %arg1[%38, %c7] : memref<6x8xi32, #tpu.memory_space<smem>>
    %40 = arith.index_cast %39 : i32 to index
    %c0_15 = arith.constant 0 : index
    %c0_16 = arith.constant 0 : index
    %41 = vector.load %arg2[%40, %c0_15, %c0_16] : memref<20x1x32xf32, #tpu.memory_space<vmem>>, vector<1x1x32xf32>
    %42 = vector.shape_cast %41 : vector<1x1x32xf32> to vector<1x32xf32>
    %43 = tpu.concatenate %7, %12, %17, %22, %27, %32, %37, %42 in 0 : vector<1x32xf32>, vector<1x32xf32>, vector<1x32xf32>, vector<1x32xf32>, vector<1x32xf32>, vector<1x32xf32>, vector<1x32xf32>, vector<1x32xf32> -> vector<8x32xf32>
    %c0_17 = arith.constant 0 : index
    %c0_18 = arith.constant 0 : index
    %44 = vector.load %arg14[%c0_17, %c0_18] : memref<8x128xf32, #tpu.memory_space<vmem>>, vector<8x128xf32>
    %c0_19 = arith.constant 0 : index
    %c0_20 = arith.constant 0 : index
    %45 = vector.load %arg5[%c0_19, %c0_20] : memref<32x512xf32, #tpu.memory_space<vmem>>, vector<32x512xf32>
    %cst = arith.constant dense<0.000000e+00> : vector<8x512xf32>
    %46 = tpu.matmul %43, %45, %cst {dimension_numbers = #tpu.dot_dimension_numbers<[1], [0], [0], [1], [0, 0, 1, 1], [], []>} : vector<8x32xf32>, vector<32x512xf32>, vector<8x512xf32> -> vector<8x512xf32>
    %c0_21 = arith.constant 0 : index
    %c0_22 = arith.constant 0 : index
    %47 = vector.load %arg13[%c0_21, %c0_22] : memref<8x512xf32, #tpu.memory_space<vmem>>, vector<8x512xf32>
    %48 = arith.addf %46, %47 : vector<8x512xf32>
    %c0_23 = arith.constant 0 : index
    %c0_24 = arith.constant 0 : index
    %49 = vector.load %arg7[%c0_23, %c0_24] : memref<128x384xf32, #tpu.memory_space<vmem>>, vector<128x384xf32>
    %cst_25 = arith.constant dense<0.000000e+00> : vector<8x384xf32>
    %50 = tpu.matmul %44, %49, %cst_25 {dimension_numbers = #tpu.dot_dimension_numbers<[1], [0], [0], [1], [0, 0, 1, 1], [], []>} : vector<8x128xf32>, vector<128x384xf32>, vector<8x384xf32> -> vector<8x384xf32>
    %51 = vector.extract_strided_slice %48 {offsets = [0, 0], sizes = [8, 128], strides = [1, 1]} : vector<8x512xf32> to vector<8x128xf32>
    %52 = vector.extract_strided_slice %50 {offsets = [0, 0], sizes = [8, 128], strides = [1, 1]} : vector<8x384xf32> to vector<8x128xf32>
    %53 = arith.addf %51, %52 : vector<8x128xf32>
    %54 = arith.negf %53 : vector<8x128xf32>
    %55 = math.exp %54 : vector<8x128xf32>
    %cst_26 = arith.constant 1.000000e+00 : f32
    %56 = vector.broadcast %cst_26 : f32 to vector<8x128xf32>
    %57 = arith.addf %56, %55 : vector<8x128xf32>
    %58 = arith.divf %56, %57 : vector<8x128xf32>
    %59 = vector.extract_strided_slice %48 {offsets = [0, 128], sizes = [8, 128], strides = [1, 1]} : vector<8x512xf32> to vector<8x128xf32>
    %60 = vector.extract_strided_slice %50 {offsets = [0, 128], sizes = [8, 128], strides = [1, 1]} : vector<8x384xf32> to vector<8x128xf32>
    %61 = arith.addf %59, %60 : vector<8x128xf32>
    %62 = arith.negf %61 : vector<8x128xf32>
    %63 = math.exp %62 : vector<8x128xf32>
    %cst_27 = arith.constant 1.000000e+00 : f32
    %64 = vector.broadcast %cst_27 : f32 to vector<8x128xf32>
    %65 = arith.addf %64, %63 : vector<8x128xf32>
    %66 = arith.divf %64, %65 : vector<8x128xf32>
    %67 = vector.extract_strided_slice %48 {offsets = [0, 256], sizes = [8, 128], strides = [1, 1]} : vector<8x512xf32> to vector<8x128xf32>
    %68 = vector.extract_strided_slice %50 {offsets = [0, 256], sizes = [8, 128], strides = [1, 1]} : vector<8x384xf32> to vector<8x128xf32>
    %c0_28 = arith.constant 0 : index
    %c0_29 = arith.constant 0 : index
    %69 = vector.load %arg10[%c0_28, %c0_29] : memref<1x128xf32, #tpu.memory_space<vmem>>, vector<1x128xf32>
    %70 = vector.broadcast %69 : vector<1x128xf32> to vector<8x128xf32>
    %71 = arith.addf %68, %70 : vector<8x128xf32>
    %72 = arith.mulf %58, %71 : vector<8x128xf32>
    %73 = arith.addf %67, %72 : vector<8x128xf32>
    %74 = math.tanh %73 : vector<8x128xf32>
    %cst_30 = arith.constant 1.000000e+00 : f32
    %75 = vector.broadcast %cst_30 : f32 to vector<8x128xf32>
    %76 = arith.subf %75, %66 : vector<8x128xf32>
    %77 = arith.mulf %76, %74 : vector<8x128xf32>
    %78 = arith.mulf %66, %44 : vector<8x128xf32>
    %79 = arith.addf %77, %78 : vector<8x128xf32>
    %c0_31 = arith.constant 0 : index
    %c0_32 = arith.constant 0 : index
    %80 = vector.load %arg14[%c0_31, %c0_32] : memref<8x128xf32, #tpu.memory_space<vmem>>, vector<8x128xf32>
    tpu.vector_store %arg14[%c0_31, %c0_32], %79 {strides = array<i32>} : memref<8x128xf32, #tpu.memory_space<vmem>>, vector<8x128xf32>,
    %c0_33 = arith.constant 0 : index
    %c0_34 = arith.constant 0 : index
    %81 = vector.load %arg12[%c0_33, %c0_34] : memref<8x128xf32, #tpu.memory_space<vmem>>, vector<8x128xf32>
    tpu.vector_store %arg12[%c0_33, %c0_34], %79 {strides = array<i32>} : memref<8x128xf32, #tpu.memory_space<vmem>>, vector<8x128xf32>,
    %82 = vector.extract_strided_slice %48 {offsets = [0, 384], sizes = [8, 128], strides = [1, 1]} : vector<8x512xf32> to vector<8x128xf32>
    %c0_35 = arith.constant 0 : index
    %c0_36 = arith.constant 0 : index
    %83 = vector.load %arg8[%c0_35, %c0_36] : memref<128x128xf32, #tpu.memory_space<vmem>>, vector<128x128xf32>
    %cst_37 = arith.constant dense<0.000000e+00> : vector<8x128xf32>
    %84 = tpu.matmul %79, %83, %cst_37 {dimension_numbers = #tpu.dot_dimension_numbers<[1], [0], [0], [1], [0, 0, 1, 1], [], []>} : vector<8x128xf32>, vector<128x128xf32>, vector<8x128xf32> -> vector<8x128xf32>
    %85 = arith.addf %82, %84 : vector<8x128xf32>
    %86 = vector.shape_cast %85 : vector<8x128xf32> to vector<1x8x128xf32>
    %c0_38 = arith.constant 0 : index
    %c0_39 = arith.constant 0 : index
    %c0_40 = arith.constant 0 : index
    %87 = vector.load %arg11[%c0_38, %c0_39, %c0_40] : memref<1x8x128xf32, #tpu.memory_space<vmem>>, vector<1x8x128xf32>
    tpu.vector_store %arg11[%c0_38, %c0_39, %c0_40], %86 {strides = array<i32>} : memref<1x8x128xf32, #tpu.memory_space<vmem>>, vector<1x8x128xf32>,
    return
  }
  func.func @transform_0(%arg0: i32, %arg1: memref<6x8xi32, #tpu.memory_space<smem>>) -> (i32, i32, i32) {
    %c0_i32 = arith.constant 0 : i32
    %c0_i32_0 = arith.constant 0 : i32
    %c0_i32_1 = arith.constant 0 : i32
    %c0_i32_2 = arith.constant 0 : i32
    return %c0_i32, %c0_i32_0, %c0_i32_1 : i32, i32, i32
  }
  func.func @transform_1(%arg0: i32, %arg1: memref<6x8xi32, #tpu.memory_space<smem>>) -> (i32, i32) {
    %c0_i32 = arith.constant 0 : i32
    %c0_i32_0 = arith.constant 0 : i32
    %c0_i32_1 = arith.constant 0 : i32
    return %c0_i32, %c0_i32_0 : i32, i32
  }
  func.func @transform_2(%arg0: i32, %arg1: memref<6x8xi32, #tpu.memory_space<smem>>) -> (i32, i32) {
    %c0_i32 = arith.constant 0 : i32
    %c0_i32_0 = arith.constant 0 : i32
    %c0_i32_1 = arith.constant 0 : i32
    return %c0_i32, %c0_i32_0 : i32, i32
  }
  func.func @transform_3(%arg0: i32, %arg1: memref<6x8xi32, #tpu.memory_space<smem>>) -> (i32, i32) {
    %c0_i32 = arith.constant 0 : i32
    %c0_i32_0 = arith.constant 0 : i32
    %c0_i32_1 = arith.constant 0 : i32
    return %c0_i32, %c0_i32_0 : i32, i32
  }
  func.func @transform_4(%arg0: i32, %arg1: memref<6x8xi32, #tpu.memory_space<smem>>) -> (i32, i32) {
    %c0_i32 = arith.constant 0 : i32
    %c0_i32_0 = arith.constant 0 : i32
    %c0_i32_1 = arith.constant 0 : i32
    return %c0_i32, %c0_i32_0 : i32, i32
  }
  func.func @transform_5(%arg0: i32, %arg1: memref<6x8xi32, #tpu.memory_space<smem>>) -> (i32, i32) {
    %c0_i32 = arith.constant 0 : i32
    %c0_i32_0 = arith.constant 0 : i32
    %c0_i32_1 = arith.constant 0 : i32
    return %c0_i32, %c0_i32_0 : i32, i32
  }
  func.func @transform_6(%arg0: i32, %arg1: memref<6x8xi32, #tpu.memory_space<smem>>) -> (i32, i32) {
    %c0_i32 = arith.constant 0 : i32
    %c0_i32_0 = arith.constant 0 : i32
    %c0_i32_1 = arith.constant 0 : i32
    return %c0_i32, %c0_i32_0 : i32, i32
  }
  func.func @transform_7(%arg0: i32, %arg1: memref<6x8xi32, #tpu.memory_space<smem>>) -> (i32, i32) {
    %c0_i32 = arith.constant 0 : i32
    %c0_i32_0 = arith.constant 0 : i32
    %c0_i32_1 = arith.constant 0 : i32
    return %c0_i32, %c0_i32_0 : i32, i32
  }
  func.func @transform_8(%arg0: i32, %arg1: memref<6x8xi32, #tpu.memory_space<smem>>) -> (i32, i32) {
    %c0_i32 = arith.constant 0 : i32
    %c0_i32_0 = arith.constant 0 : i32
    %c0_i32_1 = arith.constant 0 : i32
    return %c0_i32, %c0_i32_0 : i32, i32
  }
  func.func @transform_9(%arg0: i32, %arg1: memref<6x8xi32, #tpu.memory_space<smem>>) -> (i32, i32, i32) {
    %c0_i32 = arith.constant 0 : i32
    %c0_i32_0 = arith.constant 0 : i32
    %c0_i32_1 = arith.constant 0 : i32
    return %arg0, %c0_i32, %c0_i32_0 : i32, i32, i32
  }
  func.func @transform_10(%arg0: i32, %arg1: memref<6x8xi32, #tpu.memory_space<smem>>) -> (i32, i32) {
    %c0_i32 = arith.constant 0 : i32
    %c0_i32_0 = arith.constant 0 : i32
    %c0_i32_1 = arith.constant 0 : i32
    return %c0_i32, %c0_i32_0 : i32, i32
  }
}

</mosaic_0001>

<bundles_post_ra>
// kernel: tpu_custom_call.1
= control target key start
LH: loop header
LB: loop body
LE: loop exit
PB: predicated region body
PF: predicated region fallthrough
CT: control target
= control target key end

     0   :  { %s1671_s20 = smov [#allocation5]   ;;  %s1989_s0 = inlined_call_operand.hbm [shape: s32[6,8], index: 0, kind: input, shape index: {}]   ;;  %s1990_s1 = inlined_call_operand.hbm [shape: f32[20,1,32], index: 1, kind: input, shape index: {}]   ;;  %s1991_s2 = inlined_call_operand.hbm [shape: f32[8,128], index: 2, kind: input, shape index: {}]   ;;  %s1992_s3 = inlined_call_operand.hbm [shape: f32[8,128], index: 3, kind: input, shape index: {}]   ;;  %s1993_s4 = inlined_call_operand.hbm [shape: f32[32,512], index: 4, kind: input, shape index: {}]   ;;  %s1994_s5 = inlined_call_operand.hbm [shape: f32[128,512], index: 5, kind: input, shape index: {}]   ;;  %s1995_s6 = inlined_call_operand.hbm [shape: f32[128,384], index: 6, kind: input, shape index: {}]   ;;  %s1996_s7 = inlined_call_operand.hbm [shape: f32[128,128], index: 7, kind: input, shape index: {}]   ;;  %s1997_s8 = inlined_call_operand.vmem [shape: f32[1,512], index: 8, kind: input, shape index: {}]   ;;  %s1998_s9 = inlined_call_operand.vmem [shape: f32[1,128], index: 9, kind: input, shape index: {}]   ;;  %s1999_s10 = inlined_call_operand.hbm [shape: f32[6,8,128], index: 10, kind: output, shape index: {0}]   ;;  %s2000_s11 = inlined_call_operand.hbm [shape: f32[8,128], index: 11, kind: output, shape index: {1}]  }
   0x1   :  { %2007 = sst [smem:[#allocation31_spill]] %s1990_s1  ;;  %s18_s19 = sshll.u32 %s1989_s0, 4  ;;  %s19_s19 = int_to_ptr.hbm [resolvable:$true] %s18_s19 }
   0x2   :  { %2008 = sst [smem:[#allocation32_spill]] %s1991_s2 }
   0x3   :  { %2009 = sst [smem:[#allocation33_spill]] %s1993_s4 }
   0x4   :  { %21 = dma.hbm_to_smem %s19_s19, 128, %s1671_s20, [#allocation4] }
   0x5   :  { %1629 = dma.done.wait [#allocation4], 128 }
   0x6   :  { %1630 = vsyncadd [#allocation4], 4294967168 }
   0x7   :  { %24 = sfence }
   0x8   :  { %25 = vsyncpa [#allocation7], 0 }
   0x9   :  { %26 = vsyncpa [#allocation10], 0 }
   0xa   :  { %27 = vsyncpa [#allocation13], 0 }
   0xb   :  { %28 = vsyncpa [#allocation16], 0 }
   0xc   :  { %29 = vsyncpa [#allocation8], 0 }
   0xd   :  { %31 = vsyncpa [#allocation8 + $0x1], 0 }
   0xe   :  { %32 = vsyncpa [#allocation20], 0  ;;  %s1751_s21 = smov 0   ;;  %s1753_s22 = smov 0  }
   0xf   :  { %s1755_s23 = smov 0   ;;  %s1757_s0 = smov 0  }
  0x10 LB: > { %2010 = sst [smem:[#allocation28_spill]] %s1665_s23  ;;  %s1772_s24 = sadd.s32 4294967295, %s1669_s0   ;;  %s1669_s0 = sphi %s1757_s0, %s2023_s0   ;;  %s1665_s23 = sphi %s1755_s23, %s2025_s23   ;;  %s1661_s22 = sphi %s1753_s22, %s2027_s22   ;;  %s1657_s21 = sphi %s1751_s21, %s2026_s21  }
  0x11   : > { %s1159_s25 = sadd.s32 4294967294, %s1669_s0   ;;  %s1776_s26 = sadd.s32 1, %s1669_s0  }
  0x12   : > { %2011 = sst [smem:[#allocation29_spill]] %s1776_s26  ;;  %s234_s27 = sadd.s32 1, %s1665_s23 }
  0x13   : > { %s231_s28 = ssub.s32 %s1669_s0, %s1776_s26  ;;  %p244_p0 = scmp.ne.s32.totalorder %s1665_s23, %s1661_s22 }
  0x14   : > { %p232_p1 = scmp.eq.s32.totalorder %s231_s28, 0  ;;  %p245_p2 = scmp.eq.s32.totalorder %s1772_s24, 5 }
  0x15   : > { %p250_p3 = scmp.ne.s32.totalorder %s1661_s22, %s1657_s21  ;;  %p251_p4 = scmp.eq.s32.totalorder %s1159_s25, 5 }
  0x16   : > { %s1787_s29 = scalar_select %p232_p1, %s1665_s23, %s234_s27  }
  0x17   : > { %p1791_p5 = por %p245_p2, %p244_p0  ;;  %p1795_p6 = por %p251_p4, %p250_p3 }
  0x18   : > { %2012 = sst [smem:[#allocation30_spill]] %s1787_s29  ;;  %p1160_p7 = scmp.ge.s32.totalorder %s1669_s0, 1 }
  0x19   : > { %p279_p8 = scmp.lt.s32.totalorder %s1669_s0, 7  ;;  %p1161_p9 = scmp.ne.s32.totalorder %s1772_s24, 0 }
  0x1a   : > { %p1251_p10 = scmp.eq.s32.totalorder %s1772_s24, 0  ;;  %s2016_s2 = sld [smem:[#allocation32_spill]] }
  0x1b   : > { %p1803_p11 = pnand %p1160_p7, %p279_p8  ;;  %s1672_s17 = smov [#allocation9]  }
  0x1c   : > { %s307_s18 = sshll.u32 %s1672_s17, 4  ;;  %s2017_s4 = sld [smem:[#allocation33_spill]]  ;;  %s308_s18 = int_to_ptr.vmem [resolvable:$true] %s307_s18 }
  0x1d   : > { %p1225_p12 = pneg %p1803_p11  ;;  %s1673_s28 = smov [#allocation12]  }
  0x1e   : > { %s330_s14 = sshll.u32 %s1673_s28, 4  ;;  %s2004_s15 = smov 512   ;;  %s331_s14 = int_to_ptr.vmem [resolvable:$true] %s330_s14 }
  0x1f   : > { %p1817_p13 = pnand %p1251_p10, %p1225_p12  ;;  %s2005_s17 = smov 32  }
  0x20   : > { %s305_s16 = sshll.u32 %s2016_s2, 4  ;;  %s356_s2 = sshll.u32 %s1995_s6, 4  ;;  %s306_s16 = int_to_ptr.hbm [resolvable:$true] %s305_s16  ;;  %s357_s2 = int_to_ptr.hbm [resolvable:$true] %s356_s2 }
  0x21   : > { %1231 = dma.hbm_to_vmem [thread:$0]  (!%p1817_p13), %s306_s16, 128, %s308_s18, [#allocation10]  }
  0x22   : > { %s328_s25 = sshll.u32 %s2017_s4, 4  ;;  %s1676_s4 = smov [#allocation15]   ;;  %s329_s25 = int_to_ptr.hbm [resolvable:$true] %s328_s25 }
  0x23   : > { %1237 = dma.hbm_to_vmem [thread:$0]  (!%p1817_p13), %s329_s25, 2048, %s331_s14, [#allocation13], %s2004_s15, %s2004_s15, %s2005_s17  }
  0x24   : > { %s358_s29 = sshll.u32 %s1676_s4, 4  ;;  %s2019_s1 = sld [smem:[#allocation31_spill]]  ;;  %s359_s29 = int_to_ptr.vmem [resolvable:$true] %s358_s29 }
  0x25   : > { %s1677_s18 = smov 384   ;;  %s1678_s26 = smov 24  }
  0x26   : > { %1243 = dma.hbm_to_vmem [thread:$0]  (!%p1817_p13), %s357_s2, 6144, %s359_s29, [#allocation16], %s1677_s18, %s1677_s18, %s1678_s26  }
  0x27   : > { %s1679_s25 = smov [#allocation6]   ;;  %s1680_s19 = smov 16  }
  0x28   : > { %s292_s14 = sshll.u32 %s1679_s25, 4  ;;  %s1681_s20 = smov 1   ;;  %s293_s14 = int_to_ptr.vmem [resolvable:$true] %s292_s14 }
  0x29   : > { %s317_s17 = sshll.u32 %s1992_s3, 4  ;;  %s1682_s23 = smov [#allocation11]   ;;  %s318_s17 = int_to_ptr.hbm [resolvable:$true] %s317_s17 }
  0x2a   : > { %s290_s16 = sshll.u32 %s2019_s1, 4  ;;  %s319_s28 = sshll.u32 %s1682_s23, 4  ;;  %s291_s16 = int_to_ptr.hbm [resolvable:$true] %s290_s16  ;;  %s320_s28 = int_to_ptr.vmem [resolvable:$true] %s319_s28 }
  0x2b   : > { %1228 = dma.hbm_to_vmem [thread:$0]  (!%p1817_p13), %s291_s16, 320, %s293_s14, [#allocation7], %s1680_s19, %s1680_s19, %s1681_s20  }
  0x2c   : > { %s342_s26 = sshll.u32 %s1994_s5, 4  ;;  %s1683_s29 = smov [#allocation14]   ;;  %s343_s26 = int_to_ptr.hbm [resolvable:$true] %s342_s26 }
  0x2d   : > { %1234 = dma.hbm_to_vmem [thread:$0]  (!%p1817_p13), %s318_s17, 128, %s320_s28, [#allocation10]  }
  0x2e   : > { %s344_s18 = sshll.u32 %s1683_s29, 4  ;;  %s370_s14 = sshll.u32 %s1996_s7, 4  ;;  %s345_s18 = int_to_ptr.vmem [resolvable:$true] %s344_s18  ;;  %s371_s14 = int_to_ptr.hbm [resolvable:$true] %s370_s14 }
  0x2f   : > { %s2020_s15 = smov 32   ;;  %s2021_s19 = smov 512  }
  0x30   : > { %1240 = dma.hbm_to_vmem [thread:$0]  (!%p1817_p13), %s343_s26, 8192, %s345_s18, [#allocation13], %s2021_s19, %s2021_s19, %s2020_s15  }
  0x31   : > { %s1684_s20 = smov [#allocation17]   ;;  %s1685_s1 = smov 128  }
  0x32   : > { %s372_s4 = sshll.u32 %s1684_s20, 4  ;;  %s1686_s23 = smov 8   ;;  %s373_s4 = int_to_ptr.vmem [resolvable:$true] %s372_s4 }
  0x33   : > { %1246 = dma.hbm_to_vmem [thread:$0]  (!%p1817_p13), %s371_s14, 2048, %s373_s4, [#allocation16], %s1685_s1, %s1685_s1, %s1686_s23  }
  0x34   : > { %394 = sbr.rel (%p1803_p11) target bundleno = 587 (0x24b), region = 56 }
  0x39   : > { %1632 = dma.done.wait (%p1251_p10), [#allocation7], 320  }
  0x3a   : > { %1634 = vsyncadd (%p1251_p10), [#allocation7], 4294966976 }
  0x3b   : > { %1636 = dma.done.wait (%p1251_p10), [#allocation10], 256  }
  0x3c   : > { %1638 = vsyncadd (%p1251_p10), [#allocation10], 4294967040 }
  0x3d   : > { %1640 = dma.done.wait (%p1251_p10), [#allocation13], 10240  }
  0x3e   : > { %1642 = vsyncadd (%p1251_p10), [#allocation13], 4294957056 }
  0x3f   : > { %1644 = dma.done.wait (%p1251_p10), [#allocation16], 8192  }
  0x40   : > { %1646 = vsyncadd (%p1251_p10), [#allocation16], 4294959104  ;;  %s2006_s13 = sand.u32 1, %s1661_s22   ;;  %461 = sbr.rel (%p1161_p9) target bundleno = 237 (0xed), region = 88 }
  0x41   : > { %s1877_s27 = sshll.u32 %s2006_s13, 3 }
  0x42   : > { %s455_s17 = scalar_lea.vmem [#allocation18], %s1877_s27 }
  0x45   : > { %v525_v0 = vld [vmem:[#allocation14 + $0x1f0] sm:$0xff]  ;;  %v526_v1 = vld [vmem:[#allocation14 + $0x1f8] sm:$0xff]  ;;  %v523_v6 = vld [vmem:[#allocation14 + $0x1e0] sm:$0xff] }
  0x46   : > { %v521_v2 = vld [vmem:[#allocation14 + $0x1d0] sm:$0xff]  ;;  %577 = vmatpush.msra.mxu2 %v525_v0  ;;  %597 = vmatpush.msra.mxu3 %v526_v1  ;;  %v522_v3 = vld [vmem:[#allocation14 + $0x1d8] sm:$0xff]  ;;  %v524_v7 = vld [vmem:[#allocation14 + $0x1e8] sm:$0xff] }
  0x47   : > { %v517_v4 = vld [vmem:[#allocation14 + $0x1b0] sm:$0xff]  ;;  %v518_v5 = vld [vmem:[#allocation14 + $0x1b8] sm:$0xff]  ;;  %v519_v8 = vld [vmem:[#allocation14 + $0x1c0] sm:$0xff]  ;;  %537 = vmatpush.msra.mxu0 %v523_v6  ;;  %557 = vmatpush.msra.mxu1 %v524_v7 }
  0x48   : > { %578 = vmatpush.msra.mxu2 %v521_v2  ;;  %598 = vmatpush.msra.mxu3 %v522_v3  ;;  %v520_v9 = vld [vmem:[#allocation14 + $0x1c8] sm:$0xff]  ;;  %v513_v10 = vld [vmem:[#allocation14 + $0x190] sm:$0xff]  ;;  %v514_v11 = vld [vmem:[#allocation14 + $0x198] sm:$0xff] }
  0x49   : > { %v515_v12 = vld [vmem:[#allocation14 + $0x1a0] sm:$0xff]  ;;  %v516_v13 = vld [vmem:[#allocation14 + $0x1a8] sm:$0xff]  ;;  %538 = vmatpush.msra.mxu0 %v519_v8  ;;  %558 = vmatpush.msra.mxu1 %v520_v9  ;;  %v509_v14 = vld [vmem:[#allocation14 + $0x170] sm:$0xff] }
  0x4a   : > { %579 = vmatpush.msra.mxu2 %v517_v4  ;;  %599 = vmatpush.msra.mxu3 %v518_v5  ;;  %v510_v15 = vld [vmem:[#allocation14 + $0x178] sm:$0xff]  ;;  %v511_v16 = vld [vmem:[#allocation14 + $0x180] sm:$0xff]  ;;  %v512_v17 = vld [vmem:[#allocation14 + $0x188] sm:$0xff] }
  0x4b   : > { %539 = vmatpush.msra.mxu0 %v515_v12  ;;  %559 = vmatpush.msra.mxu1 %v516_v13  ;;  %v505_v18 = vld [vmem:[#allocation14 + $0x150] sm:$0xff]  ;;  %v506_v19 = vld [vmem:[#allocation14 + $0x158] sm:$0xff]  ;;  %v507_v20 = vld [vmem:[#allocation14 + $0x160] sm:$0xff] }
  0x4c   : > { %580 = vmatpush.msra.mxu2 %v513_v10  ;;  %600 = vmatpush.msra.mxu3 %v514_v11  ;;  %v508_v21 = vld [vmem:[#allocation14 + $0x168] sm:$0xff]  ;;  %v501_v22 = vld [vmem:[#allocation14 + $0x130] sm:$0xff]  ;;  %v502_v23 = vld [vmem:[#allocation14 + $0x138] sm:$0xff] }
  0x4d   : > { %540 = vmatpush.msra.mxu0 %v511_v16  ;;  %560 = vmatpush.msra.mxu1 %v512_v17  ;;  %v503_v24 = vld [vmem:[#allocation14 + $0x140] sm:$0xff]  ;;  %v504_v25 = vld [vmem:[#allocation14 + $0x148] sm:$0xff]  ;;  %v497_v26 = vld [vmem:[#allocation14 + $0x110] sm:$0xff] }
  0x4e   : > { %581 = vmatpush.msra.mxu2 %v509_v14  ;;  %601 = vmatpush.msra.mxu3 %v510_v15  ;;  %v498_v27 = vld [vmem:[#allocation14 + $0x118] sm:$0xff]  ;;  %v499_v28 = vld [vmem:[#allocation14 + $0x120] sm:$0xff]  ;;  %v500_v29 = vld [vmem:[#allocation14 + $0x128] sm:$0xff] }
  0x4f   : > { %541 = vmatpush.msra.mxu0 %v507_v20  ;;  %561 = vmatpush.msra.mxu1 %v508_v21  ;;  %v493_v30 = vld [vmem:[#allocation14 + $0xf0] sm:$0xff]  ;;  %v494_v31 = vld [vmem:[#allocation14 + $0xf8] sm:$0xff]  ;;  %v495_v32 = vld [vmem:[#allocation14 + $0x100] sm:$0xff] }
  0x50   : > { %582 = vmatpush.msra.mxu2 %v505_v18  ;;  %602 = vmatpush.msra.mxu3 %v506_v19  ;;  %v496_v33 = vld [vmem:[#allocation14 + $0x108] sm:$0xff]  ;;  %v489_v34 = vld [vmem:[#allocation14 + $0xd0] sm:$0xff]  ;;  %v490_v35 = vld [vmem:[#allocation14 + $0xd8] sm:$0xff] }
  0x51   : > { %542 = vmatpush.msra.mxu0 %v503_v24  ;;  %562 = vmatpush.msra.mxu1 %v504_v25  ;;  %v491_v36 = vld [vmem:[#allocation14 + $0xe0] sm:$0xff]  ;;  %v492_v37 = vld [vmem:[#allocation14 + $0xe8] sm:$0xff]  ;;  %v485_v38 = vld [vmem:[#allocation14 + $0xb0] sm:$0xff] }
  0x52   : > { %583 = vmatpush.msra.mxu2 %v501_v22  ;;  %603 = vmatpush.msra.mxu3 %v502_v23  ;;  %v486_v39 = vld [vmem:[#allocation14 + $0xb8] sm:$0xff]  ;;  %v487_v40 = vld [vmem:[#allocation14 + $0xc0] sm:$0xff]  ;;  %v488_v41 = vld [vmem:[#allocation14 + $0xc8] sm:$0xff] }
  0x53   : > { %543 = vmatpush.msra.mxu0 %v499_v28  ;;  %563 = vmatpush.msra.mxu1 %v500_v29  ;;  %v481_v42 = vld [vmem:[#allocation14 + $0x90] sm:$0xff]  ;;  %v482_v43 = vld [vmem:[#allocation14 + $0x98] sm:$0xff]  ;;  %v483_v44 = vld [vmem:[#allocation14 + $0xa0] sm:$0xff] }
  0x54   : > { %584 = vmatpush.msra.mxu2 %v497_v26  ;;  %604 = vmatpush.msra.mxu3 %v498_v27  ;;  %v484_v45 = vld [vmem:[#allocation14 + $0xa8] sm:$0xff]  ;;  %v477_v46 = vld [vmem:[#allocation14 + $0x70] sm:$0xff]  ;;  %v478_v47 = vld [vmem:[#allocation14 + $0x78] sm:$0xff] }
  0x55   : > { %544 = vmatpush.msra.mxu0 %v495_v32  ;;  %564 = vmatpush.msra.mxu1 %v496_v33  ;;  %v479_v48 = vld [vmem:[#allocation14 + $0x80] sm:$0xff]  ;;  %v480_v49 = vld [vmem:[#allocation14 + $0x88] sm:$0xff]  ;;  %v473_v50 = vld [vmem:[#allocation14 + $0x50] sm:$0xff] }
  0x56   : > { %585 = vmatpush.msra.mxu2 %v493_v30  ;;  %605 = vmatpush.msra.mxu3 %v494_v31  ;;  %v474_v51 = vld [vmem:[#allocation14 + $0x58] sm:$0xff]  ;;  %v475_v52 = vld [vmem:[#allocation14 + $0x60] sm:$0xff]  ;;  %v476_v53 = vld [vmem:[#allocation14 + $0x68] sm:$0xff] }
  0x57   : > { %545 = vmatpush.msra.mxu0 %v491_v36  ;;  %565 = vmatpush.msra.mxu1 %v492_v37  ;;  %v469_v54 = vld [vmem:[#allocation14 + $0x30] sm:$0xff]  ;;  %v470_v55 = vld [vmem:[#allocation14 + $0x38] sm:$0xff]  ;;  %v471_v56 = vld [vmem:[#allocation14 + $0x40] sm:$0xff] }
  0x58   : > { %586 = vmatpush.msra.mxu2 %v489_v34  ;;  %606 = vmatpush.msra.mxu3 %v490_v35  ;;  %v472_v57 = vld [vmem:[#allocation14 + $0x48] sm:$0xff]  ;;  %v465_v58 = vld [vmem:[#allocation14 + $0x10] sm:$0xff]  ;;  %v466_v59 = vld [vmem:[#allocation14 + $0x18] sm:$0xff] }
  0x59   : > { %546 = vmatpush.msra.mxu0 %v487_v40  ;;  %566 = vmatpush.msra.mxu1 %v488_v41  ;;  %v462_v60 = vld [vmem:[#allocation9] sm:$0xff]  ;;  %v467_v61 = vld [vmem:[#allocation14 + $0x20] sm:$0xff]  ;;  %v468_v62 = vld [vmem:[#allocation14 + $0x28] sm:$0xff] }
  0x5a   : > { %587 = vmatpush.msra.mxu2 %v485_v38  ;;  %607 = vmatpush.msra.mxu3 %v486_v39  ;;  %v463_v63 = vld [vmem:[#allocation14] sm:$0xff]  ;;  %v464_v0 = vld [vmem:[#allocation14 + $0x8] sm:$0xff]  ;;  %v621_v1 = vld [vmem:[#allocation11] sm:$0xff] }
  0x5b   : > { %547 = vmatpush.msra.mxu0 %v483_v44  ;;  %567 = vmatpush.msra.mxu1 %v484_v45  ;;  %622 = vst [vmem:[#allocation3] sm:$0xff] %v621_v1  ;;  %v527_v2 = vld [vmem:[%s1997_s8] sm:$0xf] }
  0x5c   : > { %588 = vmatpush.msra.mxu2 %v481_v42  ;;  %608 = vmatpush.msra.mxu3 %v482_v43  ;;  %v529_v3 = vperm.slane %v527_v2, 0  ;;  %v530_v4 = vperm.slane %v527_v2, 1  ;;  %v531_v5 = vperm.slane %v527_v2, 2  ;;  %v532_v6 = vperm.slane %v527_v2, 3 }
  0x5d   : > { %548 = vmatpush.msra.mxu0 %v479_v48  ;;  %568 = vmatpush.msra.mxu1 %v480_v49 }
  0x5e   : > { %589 = vmatpush.msra.mxu2 %v477_v46  ;;  %609 = vmatpush.msra.mxu3 %v478_v47 }
  0x5f   : > { %549 = vmatpush.msra.mxu0 %v475_v52  ;;  %569 = vmatpush.msra.mxu1 %v476_v53 }
  0x60   : > { %590 = vmatpush.msra.mxu2 %v473_v50  ;;  %610 = vmatpush.msra.mxu3 %v474_v51 }
  0x61   : > { %550 = vmatpush.msra.mxu0 %v471_v56  ;;  %570 = vmatpush.msra.mxu1 %v472_v57 }
  0x62   : > { %591 = vmatpush.msra.mxu2 %v469_v54  ;;  %611 = vmatpush.msra.mxu3 %v470_v55 }
  0x63   : > { %551 = vmatpush.msra.mxu0 %v467_v61  ;;  %571 = vmatpush.msra.mxu1 %v468_v62 }
  0x64   : > { %592 = vmatpush.msra.mxu2 %v465_v58  ;;  %612 = vmatpush.msra.mxu3 %v466_v59 }
  0x65   : > { %593 = vmatmul.f32.vlgmr.msra.gmra.mxu2 %v462_v60  ;;  %613 = vmatmul.f32.vlgmr.msra.gmra.mxu3 %v462_v60 }
  0x66   : > { %552 = vmatpush.msra.mxu0 %v463_v63  ;;  %572 = vmatpush.msra.mxu1 %v464_v0 }
  0x67   : > { %553 = vmatmul.f32.vlgmr.msra.gmra.mxu0 %v462_v60  ;;  %573 = vmatmul.f32.vlgmr.msra.gmra.mxu1 %v462_v60 }
  0xe4   : > { %v554_v7 = vpop.f32.mrf.mxu0  ;;  %v574_v8 = vpop.f32.mrf.mxu1 }
  0xe5   : > { %v555_v9 = vadd.f32 %v554_v7, %v529_v3  ;;  %v575_v10 = vadd.f32 %v574_v8, %v530_v4 }
  0xe7   : > { %617 = vst [vmem:[#allocation2 + $0x10] sm:$0xff] %v555_v9 }
  0xe8   : > { %v594_v11 = vpop.f32.mrf.mxu2  ;;  %v614_v12 = vpop.f32.mrf.mxu3  ;;  %618 = vst [vmem:[#allocation2] sm:$0xff] %v575_v10 }
  0xe9   : > { %v595_v13 = vadd.f32 %v594_v11, %v531_v5  ;;  %v615_v14 = vadd.f32 %v614_v12, %v532_v6 }
  0xeb   : > { %619 = vst [vmem:[#allocation2 + $0x18] sm:$0xff] %v595_v13 }
  0xec   : > { %620 = vst [vmem:[#allocation2 + $0x8] sm:$0xff] %v615_v14 }
  0xed PF: > { %v703_v15 = vld [vmem:[#allocation12 + $0x60] sm:$0xff]  ;;  %v704_v16 = vld [vmem:[#allocation12 + $0x68] sm:$0xff]  ;;  %s1886_s26 = sshll.u32 %s1772_s24, 7  ;;  %v841_v24 = vld [vmem:[#allocation15 + $0x170] sm:$0xff]  ;;  %vm676_vm0 = vcmask 1040384   ;;  %vm678_vm1 = vcmask 1041408  }
  0xee   : > { %v699_v17 = vld [vmem:[#allocation12 + $0x40] sm:$0xff]  ;;  %727 = vmatpush.msra.mxu0 %v703_v15  ;;  %747 = vmatpush.msra.mxu1 %v704_v16  ;;  %v700_v18 = vld [vmem:[#allocation12 + $0x48] sm:$0xff]  ;;  %s1889_s29 = sld [smem:[#allocation5 + %s1886_s26]]  ;;  %s627_s18 = sadd.s32 1, %s1886_s26  ;;  %v837_v25 = vld [vmem:[#allocation15 + $0x150] sm:$0xff]  ;;  %vm680_vm2 = vcmask 1042432  }
  0xef   : > { %v695_v19 = vld [vmem:[#allocation12 + $0x20] sm:$0xff]  ;;  %v696_v20 = vld [vmem:[#allocation12 + $0x28] sm:$0xff]  ;;  %s1892_s25 = sld [smem:[#allocation5 + %s627_s18]]  ;;  %s631_s16 = sadd.s32 2, %s1886_s26  ;;  %v838_v26 = vld [vmem:[#allocation15 + $0x158] sm:$0xff]  ;;  %vm682_vm3 = vcmask 1043456  }
  0xf0   : > { %728 = vmatpush.msra.mxu0 %v699_v17  ;;  %748 = vmatpush.msra.mxu1 %v700_v18  ;;  %s1895_s14 = sld [smem:[#allocation5 + %s631_s16]]  ;;  %s635_s15 = sadd.s32 3, %s1886_s26  ;;  %v691_v21 = vld [vmem:[#allocation12] sm:$0xff]  ;;  %v692_v22 = vld [vmem:[#allocation12 + $0x8] sm:$0xff]  ;;  %v705_v27 = vld [vmem:[#allocation12 + $0x70] sm:$0xff]  ;;  %vm684_vm4 = vcmask 1044480  }
  0xf1   : > { %s1898_s19 = sld [smem:[#allocation5 + %s635_s15]]  ;;  %s639_s20 = sadd.s32 4, %s1886_s26  ;;  %v840_v23 = vld [vmem:[#allocation15 + $0x168] sm:$0xff]  ;;  %v834_v28 = vld [vmem:[#allocation15 + $0x138] sm:$0xff]  ;;  %v835_v29 = vld [vmem:[#allocation15 + $0x140] sm:$0xff]  ;;  %767 = vmatpush.msra.mxu2 %v705_v27  ;;  %vm686_vm5 = vcmask 1045504  }
  0xf2   : > { %729 = vmatpush.msra.mxu0 %v695_v19  ;;  %749 = vmatpush.msra.mxu1 %v696_v20  ;;  %s1901_s4 = sld [smem:[#allocation5 + %s639_s20]]  ;;  %s643_s1 = sadd.s32 5, %s1886_s26  ;;  %v701_v30 = vld [vmem:[#allocation12 + $0x50] sm:$0xff]  ;;  %v831_v31 = vld [vmem:[#allocation15 + $0x120] sm:$0xff]  ;;  %v832_v32 = vld [vmem:[#allocation15 + $0x128] sm:$0xff]  ;;  %vm688_vm6 = vcmask 1046528  }
  0xf3   : > { %s1904_s23 = sld [smem:[#allocation5 + %s643_s1]]  ;;  %s647_s28 = sadd.s32 6, %s1886_s26  ;;  %v697_v33 = vld [vmem:[#allocation12 + $0x30] sm:$0xff]  ;;  %v828_v34 = vld [vmem:[#allocation15 + $0x108] sm:$0xff]  ;;  %768 = vmatpush.msra.mxu2 %v701_v30  ;;  %v826_v39 = vld [vmem:[#allocation15 + $0xf8] sm:$0xff]  ;;  %vm711_vm7 = vcmask 261120  }
  0xf4   : > { %730 = vmatpush.msra.mxu0 %v691_v21  ;;  %750 = vmatpush.msra.mxu1 %v692_v22  ;;  %s1907_s2 = sld [smem:[#allocation5 + %s647_s28]]  ;;  %s651_s18 = sadd.s32 7, %s1886_s26  ;;  %v829_v35 = vld [vmem:[#allocation15 + $0x110] sm:$0xff]  ;;  %v842_v40 = vld [vmem:[#allocation15 + $0x178] sm:$0xff]  ;;  %v823_v47 = vld [vmem:[#allocation15 + $0xe0] sm:$0xff] }
  0xf5   : > { %s1910_s16 = sld [smem:[#allocation5 + %s651_s18]]  ;;  %v693_v36 = vld [vmem:[#allocation12 + $0x10] sm:$0xff]  ;;  %s625_s26 = scalar_lea.vmem [#allocation6], %s1889_s29  ;;  %769 = vmatpush.msra.mxu2 %v697_v33  ;;  %v822_v42 = vld [vmem:[#allocation15 + $0xd8] sm:$0xff]  ;;  %v839_v53 = vld [vmem:[#allocation15 + $0x160] sm:$0xff] }
  0xf6   : > { %843 = vmatpush.msrb.mxu0 %v840_v23  ;;  %863 = vmatpush.msrb.mxu1 %v841_v24  ;;  %v626_v37 = vld [vmem:[%s625_s26] sm:$0x1]  ;;  %s629_s15 = scalar_lea.vmem [#allocation6], %s1892_s25  ;;  %s633_s20 = scalar_lea.vmem [#allocation6], %s1895_s14  ;;  %v819_v54 = vld [vmem:[#allocation15 + $0xc0] sm:$0xff]  ;;  %v820_v55 = vld [vmem:[#allocation15 + $0xc8] sm:$0xff] }
  0xf7   : > { %v825_v38 = vld [vmem:[#allocation15 + $0xf0] sm:$0xff]  ;;  %s637_s1 = scalar_lea.vmem [#allocation6], %s1898_s19  ;;  %770 = vmatpush.msra.mxu2 %v693_v36  ;;  %v836_v57 = vld [vmem:[#allocation15 + $0x148] sm:$0xff]  ;;  %v814_v1 = vld [vmem:[#allocation15 + $0x98] sm:$0xff]  ;;  %s1687_s14 = smov [#allocation19]  }
  0xf8   : > { %844 = vmatpush.msrb.mxu0 %v837_v25  ;;  %864 = vmatpush.msrb.mxu1 %v838_v26  ;;  %s641_s28 = scalar_lea.vmem [#allocation6], %s1901_s4  ;;  %v1317_v41 = vld [vmem:[%s629_s15] ss:$0 sm:$0xff]  ;;  %v816_v59 = vld [vmem:[#allocation15 + $0xa8] sm:$0xff]  ;;  %v830_v2 = vld [vmem:[#allocation15 + $0x118] sm:$0xff]  ;;  %s1020_s19 = sshll.u32 %s1687_s14, 4  ;;  %s1021_s19 = int_to_ptr.vmem [resolvable:$true] %s1020_s19 }
  0xf9   : > { %s645_s18 = scalar_lea.vmem [#allocation6], %s1904_s23  ;;  %v1318_v43 = vld [vmem:[%s633_s20] ss:$0 sm:$0xff]  ;;  %v677_v46 = vsel %vm676_vm0, %v626_v37, %v1317_v41  ;;  %883 = vmatpush.msrb.mxu2 %v842_v40  ;;  %v810_v3 = vld [vmem:[#allocation15 + $0x78] sm:$0xff]  ;;  %v811_v4 = vld [vmem:[#allocation15 + $0x80] sm:$0xff]  ;;  %s1605_s4 = scalar_lea.hbm %s1999_s10, 48 }
  0xfa   : > { %845 = vmatpush.msrb.mxu0 %v834_v28  ;;  %865 = vmatpush.msrb.mxu1 %v835_v29  ;;  %s649_s13 = scalar_lea.vmem [#allocation6], %s1907_s2  ;;  %v1319_v44 = vld [vmem:[%s637_s1] ss:$0 sm:$0xff]  ;;  %v679_v50 = vsel %vm678_vm1, %v677_v46, %v1318_v43  ;;  %v827_v5 = vld [vmem:[#allocation15 + $0x100] sm:$0xff]  ;;  %v808_v7 = vld [vmem:[#allocation15 + $0x68] sm:$0xff]  ;;  %s1022_s2 = sshll.u32 %s2000_s11, 4  ;;  %s1023_s2 = int_to_ptr.hbm [resolvable:$true] %s1022_s2 }
  0xfb   : > { %s653_s29 = scalar_lea.vmem [#allocation6], %s1910_s16  ;;  %v1320_v45 = vld [vmem:[%s641_s28] ss:$0 sm:$0xff]  ;;  %v681_v52 = vsel %vm680_vm2, %v679_v50, %v1319_v44  ;;  %884 = vmatpush.msrb.mxu2 %v839_v53  ;;  %v807_v6 = vld [vmem:[#allocation15 + $0x60] sm:$0xff]  ;;  %v824_v8 = vld [vmem:[#allocation15 + $0xe8] sm:$0xff]  ;;  %s1186_s16 = sshll.u32 %s1772_s24, 3 }
  0xfc   : > { %846 = vmatpush.msrb.mxu0 %v831_v31  ;;  %866 = vmatpush.msrb.mxu1 %v832_v32  ;;  %v1321_v48 = vld [vmem:[%s645_s18] ss:$0 sm:$0xff]  ;;  %v683_v56 = vsel %vm682_vm3, %v681_v52, %v1320_v45  ;;  %v804_v9 = vld [vmem:[#allocation15 + $0x48] sm:$0xff]  ;;  %v802_v13 = vld [vmem:[#allocation15 + $0x38] sm:$0xff]  ;;  %s1006_s20 = scalar_lea.hbm %s1999_s10, %s1186_s16  ;;  %s1008_s1 = sshll.u32 %s455_s17, 4  ;;  %s1009_s1 = int_to_ptr.vmem [resolvable:$true] %s1008_s1 }
  0xfd   : > { %v1322_v49 = vld [vmem:[%s649_s13] ss:$0 sm:$0xff]  ;;  %v685_v58 = vsel %vm684_vm4, %v683_v56, %v1321_v48  ;;  %885 = vmatpush.msrb.mxu2 %v836_v57  ;;  %v818_v14 = vld [vmem:[#allocation15 + $0xb8] sm:$0xff]  ;;  %v799_v16 = vld [vmem:[#allocation15 + $0x20] sm:$0xff]  ;;  %s1010_s28 = sshll.u32 %s1006_s20, 4  ;;  %s2022_s18 = sand.u32 1, %s1661_s22   ;;  %s1011_s28 = int_to_ptr.hbm [resolvable:$true] %s1010_s28 }
  0xfe   : > { %847 = vmatpush.msrb.mxu0 %v828_v34  ;;  %867 = vmatpush.msrb.mxu1 %v829_v35  ;;  %v1323_v51 = vld [vmem:[%s653_s29] ss:$0 sm:$0xff]  ;;  %v687_v61 = vsel %vm686_vm5, %v685_v58, %v1322_v49  ;;  %v798_v15 = vld [vmem:[#allocation15 + $0x18] sm:$0xff]  ;;  %v815_v17 = vld [vmem:[#allocation15 + $0xa0] sm:$0xff]  ;;  %s996_s29 = scalar_lea.sflag [#allocation8], %s2022_s18  ;;  %s1599_s13 = sshra.s32 %s1011_s28, 4  ;;  %s1600_s13 = int_to_ptr.hbm [resolvable:$true] %s1599_s13 }
  0xff   : > { %v817_v60 = vld [vmem:[#allocation15 + $0xb0] sm:$0xff]  ;;  %v1924_v62 = vsel %vm688_vm6, %v687_v61, %v1323_v51  ;;  %v795_v18 = vld [vmem:[#allocation15] sm:$0xff]  ;;  %v796_v19 = vld [vmem:[#allocation15 + $0x8] sm:$0xff]  ;;  %s1601_s25 = scalar_lea.hbm %s1600_s13, 8  ;;  %p1606_p4 = scmp.lt.s32.totalorder %s1600_s13, %s1999_s10 }
 0x100   : > { %848 = vmatpush.msrb.mxu0 %v825_v38  ;;  %868 = vmatpush.msrb.mxu1 %v826_v39  ;;  %v833_v63 = vld [vmem:[#allocation15 + $0x130] sm:$0xff]  ;;  %v812_v21 = vld [vmem:[#allocation15 + $0x88] sm:$0xff]  ;;  %v806_v23 = vld [vmem:[#allocation15 + $0x58] sm:$0xff]  ;;  %p1602_p0 = scmp.ne.s32.totalorder %s1600_s13, %s1601_s25  ;;  %p1607_p7 = scmp.lt.s32.totalorder %s1605_s4, %s1601_s25 }
 0x101   : > { %v813_v0 = vld [vmem:[#allocation15 + $0x90] sm:$0xff]  ;;  %1179 = vmatmul.msk.f32.vlgmr.msra.gmra.mxu0 %vm711_vm7, %v1924_v62  ;;  %1180 = vmatmul.msk.f32.vlgmr.msra.gmra.mxu1 %vm711_vm7, %v1924_v62  ;;  %v803_v24 = vld [vmem:[#allocation15 + $0x40] sm:$0xff]  ;;  %v800_v25 = vld [vmem:[#allocation15 + $0x28] sm:$0xff] }
 0x102   : > { %849 = vmatpush.msrb.mxu0 %v822_v42  ;;  %869 = vmatpush.msrb.mxu1 %v823_v47  ;;  %v805_v10 = vld [vmem:[#allocation15 + $0x50] sm:$0xff]  ;;  %v706_v27 = vld [vmem:[#allocation12 + $0x78] sm:$0xff]  ;;  %v970_v33 = vld [vmem:[#allocation17 + $0x68] sm:$0xff]  ;;  %p1603_p1 = pnand %p1602_p0, %p1791_p5  ;;  %p1608_p8 = por %p1607_p7, %p1606_p4 }
 0x103   : > { %886 = vmatpush.msrb.mxu2 %v833_v63  ;;  %v821_v11 = vld [vmem:[#allocation15 + $0xd0] sm:$0xff]  ;;  %787 = vmatpush.msra.mxu3 %v706_v27  ;;  %v702_v28 = vld [vmem:[#allocation12 + $0x58] sm:$0xff]  ;;  %v969_v34 = vld [vmem:[#allocation17 + $0x60] sm:$0xff] }
 0x104   : > { %850 = vmatpush.msrb.mxu0 %v819_v54  ;;  %870 = vmatpush.msrb.mxu1 %v820_v55  ;;  %v801_v12 = vld [vmem:[#allocation15 + $0x30] sm:$0xff]  ;;  %v698_v29 = vld [vmem:[#allocation12 + $0x38] sm:$0xff]  ;;  %v966_v39 = vld [vmem:[#allocation17 + $0x48] sm:$0xff]  ;;  %p1604_p3 = pneg %p1603_p1 }
 0x105   : > { %887 = vmatpush.msrb.mxu2 %v830_v2  ;;  %v1930_v20 = vld [vmem:[#allocation3] sm:$0xff]  ;;  %788 = vmatpush.msra.mxu3 %v702_v28  ;;  %v707_v41 = vld [vmem:[#allocation2 + $0x10] sm:$0xff] }
 0x106   : > { %851 = vmatpush.msrb.mxu0 %v816_v59  ;;  %871 = vmatpush.msrb.mxu1 %v817_v60  ;;  %v809_v22 = vld [vmem:[#allocation15 + $0x70] sm:$0xff]  ;;  %v694_v30 = vld [vmem:[#allocation12 + $0x18] sm:$0xff]  ;;  %v965_v43 = vld [vmem:[#allocation17 + $0x40] sm:$0xff]  ;;  %p1609_p9 = pnand %p1608_p8, %p1604_p3 }
 0x107   : > { %888 = vmatpush.msrb.mxu2 %v827_v5  ;;  %v797_v26 = vld [vmem:[#allocation15 + $0x10] sm:$0xff]  ;;  %789 = vmatpush.msra.mxu3 %v698_v29  ;;  %v972_v31 = vld [vmem:[#allocation17 + $0x78] sm:$0xff]  ;;  %v962_v53 = vld [vmem:[#allocation17 + $0x28] sm:$0xff] }
 0x108   : > { %852 = vmatpush.msrb.mxu0 %v813_v0  ;;  %872 = vmatpush.msrb.mxu1 %v814_v1  ;;  %v971_v32 = vld [vmem:[#allocation17 + $0x70] sm:$0xff]  ;;  %v968_v37 = vld [vmem:[#allocation17 + $0x58] sm:$0xff]  ;;  %v961_v54 = vld [vmem:[#allocation17 + $0x20] sm:$0xff] }
 0x109   : > { %889 = vmatpush.msrb.mxu2 %v824_v8  ;;  %790 = vmatpush.msra.mxu3 %v694_v30  ;;  %v967_v38 = vld [vmem:[#allocation17 + $0x50] sm:$0xff]  ;;  %v964_v45 = vld [vmem:[#allocation17 + $0x38] sm:$0xff]  ;;  %v958_v57 = vld [vmem:[#allocation17 + $0x8] sm:$0xff] }
 0x10a   : > { %853 = vmatpush.msrb.mxu0 %v810_v3  ;;  %873 = vmatpush.msrb.mxu1 %v811_v4  ;;  %v708_v40 = vld [vmem:[#allocation2] sm:$0xff]  ;;  %v957_v59 = vld [vmem:[#allocation17] sm:$0xff] }
 0x10b   : > { %890 = vmatpush.msrb.mxu2 %v821_v11  ;;  %973 = vmatpush.msrb.mxu3 %v972_v31  ;;  %v963_v50 = vld [vmem:[#allocation17 + $0x30] sm:$0xff]  ;;  %v960_v55 = vld [vmem:[#allocation17 + $0x18] sm:$0xff] }
 0x10c   : > { %854 = vmatpush.msrb.mxu0 %v807_v6  ;;  %874 = vmatpush.msrb.mxu1 %v808_v7  ;;  %v959_v56 = vld [vmem:[#allocation17 + $0x10] sm:$0xff] }
 0x10d   : > { %891 = vmatpush.msrb.mxu2 %v818_v14  ;;  %1182 = vmatmul.msk.f32.vlgmr.msra.gmra.mxu3 %vm711_vm7, %v1924_v62  ;;  %v1324_v5 = vld [vmem:[%s1998_s9] ss:$0 sm:$0xff]  ;;  %v709_v14 = vld [vmem:[#allocation2 + $0x18] sm:$0xff] }
 0x10e   : > { %855 = vmatpush.msrb.mxu0 %v804_v9  ;;  %875 = vmatpush.msrb.mxu1 %v805_v10 }
 0x10f   : > { %892 = vmatpush.msrb.mxu2 %v815_v17  ;;  %974 = vmatpush.msrb.mxu3 %v971_v32 }
 0x110   : > { %856 = vmatpush.msrb.mxu0 %v801_v12  ;;  %876 = vmatpush.msrb.mxu1 %v802_v13 }
 0x111   : > { %893 = vmatpush.msrb.mxu2 %v812_v21  ;;  %975 = vmatpush.msrb.mxu3 %v970_v33 }
 0x112   : > { %857 = vmatpush.msrb.mxu0 %v798_v15  ;;  %877 = vmatpush.msrb.mxu1 %v799_v16 }
 0x113   : > { %1181 = vmatmul.msk.f32.vlgmr.msra.gmra.mxu2 %vm711_vm7, %v1924_v62  ;;  %976 = vmatpush.msrb.mxu3 %v969_v34 }
 0x114   : > { %858 = vmatpush.msrb.mxu0 %v795_v18  ;;  %878 = vmatpush.msrb.mxu1 %v796_v19 }
 0x115   : > { %859 = vmatmul.f32.vlgmr.msrb.gmra.mxu0 %v1930_v20  ;;  %879 = vmatmul.f32.vlgmr.msrb.gmra.mxu1 %v1930_v20 }
 0x116   : > { %894 = vmatpush.msrb.mxu2 %v809_v22  ;;  %977 = vmatpush.msrb.mxu3 %v968_v37 }
 0x118   : > { %895 = vmatpush.msrb.mxu2 %v806_v23  ;;  %978 = vmatpush.msrb.mxu3 %v967_v38 }
 0x11a   : > { %896 = vmatpush.msrb.mxu2 %v803_v24  ;;  %979 = vmatpush.msrb.mxu3 %v966_v39 }
 0x11c   : > { %897 = vmatpush.msrb.mxu2 %v800_v25  ;;  %980 = vmatpush.msrb.mxu3 %v965_v43 }
 0x11e   : > { %898 = vmatpush.msrb.mxu2 %v797_v26  ;;  %981 = vmatpush.msrb.mxu3 %v964_v45 }
 0x11f   : > { %899 = vmatmul.f32.vlgmr.msrb.gmra.mxu2 %v1930_v20 }
 0x120   : > { %982 = vmatpush.msrb.mxu3 %v963_v50 }
 0x122   : > { %983 = vmatpush.msrb.mxu3 %v962_v53 }
 0x124   : > { %984 = vmatpush.msrb.mxu3 %v961_v54 }
 0x126   : > { %985 = vmatpush.msrb.mxu3 %v960_v55 }
 0x128   : > { %986 = vmatpush.msrb.mxu3 %v959_v56 }
 0x12a   : > { %987 = vmatpush.msrb.mxu3 %v958_v57 }
 0x12c   : > { %988 = vmatpush.msrb.mxu3 %v957_v59 }
 0x17e   : > { %v732_v35 = vpop.f32.mrf.mxu0  ;;  %v752_v36 = vpop.f32.mrf.mxu1 }
 0x17f   : > { %v753_v42 = vadd.f32 %v752_v36, %v708_v40  ;;  %v733_v44 = vadd.f32 %v732_v35, %v707_v41 }
 0x190   : > { %v792_v33 = vpop.f32.mrf.mxu3 }
 0x192   : > { %v860_v46 = vpop.f32.mrf.mxu0  ;;  %v880_v47 = vpop.f32.mrf.mxu1 }
 0x193   : > { %v903_v48 = vadd.f32 %v860_v46, %v733_v44  ;;  %v923_v49 = vadd.f32 %v880_v47, %v753_v42 }
 0x195   : > { %v1183_v51 = vmul.f32 -1.442695, %v903_v48  ;;  %v1184_v52 = vmul.f32 -1.442695, %v923_v49 }
 0x196   : > { %v772_v63 = vpop.f32.mrf.mxu2 }
 0x197   : > { %1325 = vpow2.f32 %v1183_v51  ;;  %v773_v19 = vadd.f32 %v772_v63, %v709_v14 }
 0x198   : > { %1327 = vpow2.f32 %v1184_v52 }
 0x19d   : > { %v1326_v58 = vpop.eup %1325 }
 0x19e   : > { %v1328_v60 = vpop.eup %1327  ;;  %v907_v61 = vadd.f32 1.0, %v1326_v58 }
 0x19f   : > { %v927_v62 = vadd.f32 1.0, %v1328_v60 }
 0x1a0   : > { %1329 = vrcp.f32 %v907_v61  ;;  %v919_v8 = vand.u32 2147483648, %v907_v61  ;;  %v917_v10 = vand.u32 2147483647, %v907_v61  ;;  %vm913_vm9 = vweird.f32 %v907_v61 }
 0x1a1   : > { %1331 = vrcp.f32 %v927_v62  ;;  %v939_v22 = vand.u32 2147483648, %v927_v62  ;;  %vm933_vm13 = vweird.f32 %v927_v62  ;;  %v937_v23 = vand.u32 2147483647, %v927_v62 }
 0x1a2   : > { %v900_v7 = vpop.f32.mrf.mxu2  ;;  %v920_v15 = vor.u32 1.1754944e-38, %v919_v8  ;;  %vm918_vm11 = vcmp.eq.f32.partialorder %v917_v10, 8.507059e+37 }
 0x1a3   : > { %v947_v13 = vadd.f32 %v1324_v5, %v900_v7  ;;  %v940_v26 = vor.u32 1.1754944e-38, %v939_v22  ;;  %vm938_vm15 = vcmp.eq.f32.partialorder %v937_v23, 8.507059e+37 }
 0x1a6   : > { %v1330_v0 = vpop.eup %1329 }
 0x1a7   : > { %v1332_v1 = vpop.eup %1331  ;;  %v909_v2 = vmul.f32 %v1330_v0, %v907_v61  ;;  %vm914_vm8 = vweird.f32 %v1330_v0 }
 0x1a8   : > { %v929_v3 = vmul.f32 %v1332_v1, %v927_v62  ;;  %vm915_vm10 = vmor %vm913_vm9, %vm914_vm8  ;;  %vm934_vm12 = vweird.f32 %v1332_v1 }
 0x1a9   : > { %v910_v4 = vsub.f32 1.0, %v909_v2  ;;  %vm935_vm14 = vmor %vm933_vm13, %vm934_vm12 }
 0x1aa   : > { %v930_v6 = vsub.f32 1.0, %v929_v3 }
 0x1ab   : > { %v911_v9 = vmul.f32 %v1330_v0, %v910_v4 }
 0x1ac   : > { %v931_v11 = vmul.f32 %v1332_v1, %v930_v6 }
 0x1ad   : > { %v912_v12 = vadd.f32 %v1330_v0, %v911_v9 }
 0x1ae   : > { %v932_v18 = vadd.f32 %v1332_v1, %v931_v11 }
 0x1af   : > { %v916_v16 = vsel %vm915_vm10, %v1330_v0, %v912_v12 }
 0x1b0   : > { %v921_v17 = vsel %vm918_vm11, %v920_v15, %v916_v16  ;;  %v936_v25 = vsel %vm935_vm14, %v1332_v1, %v932_v18 }
 0x1b1   : > { %v948_v21 = vmul.f32 %v947_v13, %v921_v17  ;;  %v941_v27 = vsel %vm938_vm15, %v940_v26, %v936_v25 }
 0x1b2   : > { %v951_v28 = vsub.f32 1.0, %v941_v27  ;;  %v953_v31 = vmul.f32 %v941_v27, %v1930_v20  ;;  %v710_v20 = vld [vmem:[#allocation2 + $0x8] sm:$0xff] }
 0x1b3   : > { %v949_v24 = vadd.f32 %v948_v21, %v773_v19  ;;  %v793_v34 = vadd.f32 %v792_v33, %v710_v20 }
 0x1b5   : > { %1333 = vtanh.f32 %v949_v24 }
 0x1bb   : > { %v1334_v29 = vpop.eup %1333 }
 0x1bc   : > { %v952_v30 = vmul.f32 %v1334_v29, %v951_v28 }
 0x1be   : > { %v954_v32 = vadd.f32 %v953_v31, %v952_v30 }
 0x1c0   : > { %955 = vst [vmem:[#allocation3] sm:$0xff] %v954_v32  ;;  %989 = vmatmul.f32.vlgmr.msrb.gmra.mxu3 %v954_v32 }
 0x1c1   : > { %956 = vst [vmem:[#allocation19] sm:$0xff] %v954_v32 }
 0x1c2   : > { %1221 = dma.vmem_to_hbm [thread:$0]  (%p245_p2), %s1021_s19, 128, %s1023_s2, [#allocation20]  }
 0x243   : > { %v990_v35 = vpop.f32.mrf.mxu3 }
 0x244   : > { %v993_v36 = vadd.f32 %v990_v35, %v793_v34 }
 0x246   : > { %994 = vst [vmem:[%s455_s17] sm:$0xff] %v993_v36 }
 0x247   : > { %1612 = shalt.err (!%p1609_p9)
}
 0x248   : > { %1219 = dma.vmem_to_hbm [thread:$0]  (%p1791_p5), %s1009_s1, 128, %s1011_s28, %s996_s29  }
 0x249   : > { %1648 = dma.done.wait (%p245_p2), [#allocation20], 128  }
 0x24a   : > { %1650 = vsyncadd (%p245_p2), [#allocation20], 4294967168 }
 0x24b PF: > { %p1267_p10 = scmp.ge.s32.totalorder %s1669_s0, 2  ;;  %s1039_s27 = sand.u32 1, %s1657_s21  }
 0x24c   : > { %s1040_s17 = scalar_lea.sflag [#allocation8], %s1039_s27 }
 0x24d   : > { %p1248_p11 = pnand %p1267_p10, %p1795_p6 }
 0x24f   : > { %p1249_p12 = pneg %p1248_p11 }
 0x251   : > { %1652 = dma.done.wait (%p1249_p12), %s1040_s17, 128  }
 0x252   : > { %1654 = vsyncadd (%p1249_p12), %s1040_s17, 4294967168  ;;  %s2023_s0 = sld [smem:[#allocation29_spill]]  ;;  %s2026_s21 = smov %s1661_s22 }
 0x253   : > { %s2024_s30 = sld [smem:[#allocation28_spill]] }
 0x254   : > { %s2025_s23 = sld [smem:[#allocation30_spill]] }
 0x258   : > { %p35_p5 = scmp.ge.s32.totalorder %s2023_s0, 8  }
 0x259   : > { %s2027_s22 = smov %s2024_s30 }
 0x25a   :  { %37 = sbr.rel (!%p35_p5) target bundleno = 16 (0x10), region = 137 }
 0x25f   :  { %1046 = vsyncpa [#allocation7], 1 }
 0x260   :  { %1048 = vsyncpa [#allocation7 + $0x1], 1 }
 0x261   :  { %1049 = vsyncpa [#allocation10], 1 }
 0x262   :  { %1050 = vsyncpa [#allocation13], 1 }
 0x263   :  { %1051 = vsyncpa [#allocation16], 1 }
 0x264   :  { %1052 = vsyncpa [#allocation8], 1 }
 0x265   :  { %1054 = vsyncpa [#allocation8 + $0x1], 1 }
 0x266   :  { %1055 = vsyncpa [#allocation20], 1 }

</bundles_post_ra>
